<compile_context>
chip_gen: v6e
topology: v6e:2x2x1
jax: 0.10.0
libtpu: 0.0.40
codegen_flags: <defaults>
</compile_context>

<pallas_src>
import functools

import jax
import jax.numpy as jnp
import numpy as np
from jax.experimental import pallas as pl
from jax.experimental.pallas import tpu as pltpu

_OUT_LANES = 128  # lane-dense output slab width (full vreg lane count)


# --------------------------------------------------------------------------- #
# Kernel
# --------------------------------------------------------------------------- #
def _model_kernel(*refs, onepole, four, gather_in_kernel):
    """One batch tile.

    Operand order (only the refs used by the static config are present):
      gather_in_kernel: idx_ref (bm, 8) i32, emb_ref (V, D) f32
      else            : rows_ref (n_roles, bm, D) f32
      wx_ref (D, D), wy_ref (D, D), b_ref (1, D)
      [onepole] wr23_ref (D, 2D), br23_ref (1, 2D)
      [four]    w0_ref (D, D),   b0_ref (1, D)
      out_ref (bm, 128)  lane-dense slab; scores live in lanes 0..n_out-1
    """
    f32 = jnp.float32
    pos = 0
    if gather_in_kernel:
        idx_ref, emb_ref = refs[0], refs[1]
        pos = 2
    else:
        rows_ref = refs[0]
        pos = 1
    wx_ref, wy_ref, b_ref = refs[pos], refs[pos + 1], refs[pos + 2]
    pos += 3
    if onepole:
        wr23_ref, br23_ref = refs[pos], refs[pos + 1]
        pos += 2
    if four:
        w0_ref, b0_ref = refs[pos], refs[pos + 1]
        pos += 2
    out_ref = refs[pos]

    D = wx_ref.shape[1]

    # ---- embedding rows ----------------------------------------------------
    if gather_in_kernel:
        emb = emb_ref[...]                                        # (V, D)
        V = emb.shape[0]
        idx = idx_ref[...]                                        # (bm, 8) i32
        lane_v = jax.lax.broadcasted_iota(jnp.int32, (1, V), 1)

        def gather(r):
            onehot = (idx[:, r:r + 1] == lane_v).astype(f32)      # (bm, V)
            return jnp.dot(onehot, emb, preferred_element_type=f32)

        X, Y, R1 = gather(0), gather(1), gather(2)
        if not onepole:
            R2, R3 = gather(3), gather(4)
    else:
        X, Y, R1 = rows_ref[0], rows_ref[1], rows_ref[2]
        if not onepole:
            R2, R3 = rows_ref[3], rows_ref[4]

    # ---- R2 / R3 (fused single MXU matmul in the onepole branch) -----------
    if onepole:
        r23 = jnp.dot(R1, wr23_ref[...], preferred_element_type=f32) + br23_ref[...]
        R2, R3 = r23[:, :D], r23[:, D:]

    # ---- h = linear(cat([X, Y], 1)) = X @ Wx_t + Y @ Wy_t + b ---------------
    h = (jnp.dot(X, wx_ref[...], preferred_element_type=f32)
         + jnp.dot(Y, wy_ref[...], preferred_element_type=f32)
         + b_ref[...])

    cols = [
        jnp.sum(h * R1, axis=1, keepdims=True),   # OR1  (bm, 1)
        jnp.sum(h * R2, axis=1, keepdims=True),   # OR2
        jnp.sum(h * R3, axis=1, keepdims=True),   # OR3
    ]
    if four:
        # OR4 = (hx + hy).(R1 + R3)  with hx + hy = (X + Y) @ W0_t + 2*b0
        hxy = (jnp.dot(X + Y, w0_ref[...], preferred_element_type=f32)
               + 2.0 * b0_ref[...])
        cols.append(jnp.sum(hxy * (R1 + R3), axis=1, keepdims=True))

    # ---- select-only lane scatter into a full 128-lane slab -----------------
    lane = jax.lax.broadcasted_iota(jnp.int32, (1, _OUT_LANES), 1)
    acc = jnp.float32(0.0)
    for j in reversed(range(len(cols))):
        acc = jnp.where(lane == j, cols[j], acc)
    out_ref[...] = acc


# --------------------------------------------------------------------------- #
# Host-side helpers
# --------------------------------------------------------------------------- #
def _chip_config():
    """Generation-aware VMEM budget / limit and multi-TensorCore flag."""
    vmem_cap = 64 * 1024 * 1024          # conservative floor (v7x per-TC)
    multi_tc = False
    try:
        vmem_cap = int(pltpu.get_tpu_info().vmem_capacity_bytes)
    except Exception:
        pass
    try:
        kind = jax.devices()[0].device_kind.lower()
        multi_tc = any(t in kind for t in ("v4", "v5p", "v7"))
    except Exception:
        pass
    vmem_limit = max(32 * 1024 * 1024,
                     min(int(0.75 * vmem_cap), vmem_cap - 8 * 1024 * 1024))
    budget = min(64 * 1024 * 1024, int(0.75 * vmem_limit))
    return budget, int(vmem_limit), multi_tc


def _pick_bm(batch, n_roles, D, V, *, gather_in_kernel, onepole, four,
             budget_bytes, multi_tc):
    """Largest batch tile that fits the VMEM budget."""
    # Resident weights: single-buffered (pl.Buffered(1)).
    n_mat_elems = 2 * D * D                       # wx_t, wy_t
    if onepole:
        n_mat_elems += 2 * D * D                  # fused (D, 2D)
    if four:
        n_mat_elems += D * D                      # w0_t
    if gather_in_kernel:
        n_mat_elems += V * D                      # embedding table in VMEM
    weight_bytes = 4 * (n_mat_elems + 6 * D)      # + biases (generous)

    # Per batch-row bytes: pipelined input (x2 buffers) + output slab (x2)
    # + live f32 temporaries (gathered rows, h, fused R2R3 / hxy, one-hot).
    if gather_in_kernel:
        in_row = 2 * 8 * 4
        temp_row = (n_roles * D + 4 * D + 2 * V) * 4
    else:
        in_row = 2 * n_roles * D * 4
        temp_row = 4 * D * 4
    out_row = 2 * _OUT_LANES * 4
    row_bytes = in_row + out_row + temp_row

    avail = max(budget_bytes - weight_bytes, 1 << 20)
    bm = max(8, min(2048, avail // row_bytes)) // 8 * 8

    b8 = -(-batch // 8) * 8
    if b8 <= bm:
        if multi_tc and b8 >= 16:
            # Split into two tiles so the "parallel" batch axis can be
            # sharded across both TensorCores (v4 / v5p / v7x megacore).
            bm = max(8, (-(-b8 // 2) + 7) // 8 * 8)
        else:
            bm = b8
    return int(bm)


def prepare_params(params):
    """One-time weight prep: 'x @ W_t + b' layout, fused R2|R3 weight."""
    D = int(params["linear_w"].shape[0])
    W = jnp.asarray(params["linear_w"], jnp.float32)              # (D, 2D)
    return {
        "wx_t": jnp.asarray(W[:, :D].T),                          # (D, D)
        "wy_t": jnp.asarray(W[:, D:].T),                          # (D, D)
        "b": jnp.asarray(params["linear_b"], jnp.float32).reshape(1, D),
        "wr23_t": jnp.concatenate(
            [jnp.asarray(params["linearR2_w"], jnp.float32).T,
             jnp.asarray(params["linearR3_w"], jnp.float32).T], axis=1),  # (D, 2D)
        "br23": jnp.concatenate(
            [jnp.asarray(params["linearR2_b"], jnp.float32),
             jnp.asarray(params["linearR3_b"], jnp.float32)]).reshape(1, 2 * D),
        "w0_t": jnp.asarray(params["linear0_w"], jnp.float32).T,  # (D, D)
        "b0": jnp.asarray(params["linear0_b"], jnp.float32).reshape(1, D),
    }


# --------------------------------------------------------------------------- #
# Forward
# --------------------------------------------------------------------------- #
@functools.partial(jax.jit,
                   static_argnames=("onepole", "four", "force_xla_gather"))
def model_forward(indices, embeddings, prep, onepole="false", four="false",
                  force_xla_gather=False):
    """indices: (B, 5) int32; embeddings: (V, D) f32 -> (B, 3|4) f32."""
    onepole_b = onepole == "true"
    four_b = four == "true"
    B = indices.shape[0]
    V, D = embeddings.shape
    n_roles = 3 if onepole_b else 5
    n_out = 4 if four_b else 3

    # In-kernel (one-hot MXU) gather when the table comfortably fits VMEM.
    gather_in_kernel = ((not force_xla_gather)
                        and (V * D * 4 <= (4 << 20)) and (V <= 2048))

    budget, vmem_limit, multi_tc = _chip_config()
    bm = _pick_bm(B, n_roles, D, V, gather_in_kernel=gather_in_kernel,
                  onepole=onepole_b, four=four_b,
                  budget_bytes=budget, multi_tc=multi_tc)
    Bp = pl.cdiv(B, bm) * bm

    def const_spec(shape):
        # Grid-invariant block: single-buffered (no point double-buffering).
        return pl.BlockSpec(shape, lambda i: (0, 0),
                            pipeline_mode=pl.Buffered(1))

    operands, in_specs = [], []
    if gather_in_kernel:
        idx = jnp.pad(indices[:, :n_roles].astype(jnp.int32),
                      ((0, Bp - B), (0, 8 - n_roles)))             # (Bp, 8)
        operands += [idx, embeddings.astype(jnp.float32)]
        in_specs += [pl.BlockSpec((bm, 8), lambda i: (i, 0)),
                     const_spec((V, D))]
    else:
        # Fallback for large vocabularies: one fused XLA row gather.
        idx_t = indices[:, :n_roles].astype(jnp.int32).T           # (n_roles, B)
        rows = jnp.take(embeddings.astype(jnp.float32), idx_t, axis=0)
        if Bp != B:
            rows = jnp.pad(rows, ((0, 0), (0, Bp - B), (0, 0)))
        operands += [rows]
        in_specs += [pl.BlockSpec((n_roles, bm, D), lambda i: (0, i, 0))]

    operands += [prep["wx_t"], prep["wy_t"], prep["b"]]
    in_specs += [const_spec((D, D)), const_spec((D, D)), const_spec((1, D))]
    if onepole_b:
        operands += [prep["wr23_t"], prep["br23"]]
        in_specs += [const_spec((D, 2 * D)), const_spec((1, 2 * D))]
    if four_b:
        operands += [prep["w0_t"], prep["b0"]]
        in_specs += [const_spec((D, D)), const_spec((1, D))]

    kernel = functools.partial(_model_kernel, onepole=onepole_b, four=four_b,
                               gather_in_kernel=gather_in_kernel)

    out = pl.pallas_call(
        kernel,
        out_shape=jax.ShapeDtypeStruct((Bp, _OUT_LANES), jnp.float32),
        grid_spec=pl.GridSpec(
            grid=(Bp // bm,),
            in_specs=in_specs,
            out_specs=pl.BlockSpec((bm, _OUT_LANES), lambda i: (i, 0)),
        ),
        compiler_params=pltpu.CompilerParams(
            dimension_semantics=("parallel",),
            vmem_limit_bytes=vmem_limit,
        ),
    )(*operands)

    return out[:B, :n_out]


# --------------------------------------------------------------------------- #
# Reference + test harness
# --------------------------------------------------------------------------- #
def _reference_np(indices, embeddings, params, onepole, four):
    """Pure numpy (float64) reference of the PyTorch forward (eval mode)."""
    emb = np.asarray(embeddings, np.float64)
    idx = np.asarray(indices)
    X, Y, R1 = emb[idx[:, 0]], emb[idx[:, 1]], emb[idx[:, 2]]
    if onepole == "true":
        R2 = R1 @ np.asarray(params["linearR2_w"], np.float64).T + np.asarray(params["linearR2_b"], np.float64)
        R3 = R1 @ np.asarray(params["linearR3_w"], np.float64).T + np.asarray(params["linearR3_b"], np.float64)
    else:
        R2, R3 = emb[idx[:, 3]], emb[idx[:, 4]]
    W = np.asarray(params["linear_w"], np.float64)
    b = np.asarray(params["linear_b"], np.float64)
    h = np.concatenate([X, Y], 1) @ W.T + b
    OR1 = np.sum(h * R1, 1)
    OR2 = np.sum(h * R2, 1)
    OR3 = np.sum(h * R3, 1)
    if four == "true":
        W0 = np.asarray(params["linear0_w"], np.float64)
        b0 = np.asarray(params["linear0_b"], np.float64)
        hx = X @ W0.T + b0
        hy = Y @ W0.T + b0
        OR4 = (np.sum(hx * R1, 1) + np.sum(hx * R3, 1)
               + np.sum(hy * R1, 1) + np.sum(hy * R3, 1))
        return np.stack([OR1, OR2, OR3, OR4], 1)
    return np.stack([OR1, OR2, OR3], 1)


if __name__ == "__main__":
    key = jax.random.PRNGKey(0)
    keys = jax.random.split(key, 12)

    vocab, hidden, batch = 64, 32, 16
    s = 1.0 / np.sqrt(hidden)

    embeddings = jax.random.normal(keys[0], (vocab, hidden), dtype=jnp.float32)
    indices = jax.random.randint(keys[1], (batch, 5), 0, vocab, dtype=jnp.int32)
    params = {
        "linear_w":   jax.random.normal(keys[2], (hidden, 2 * hidden), jnp.float32) * s,
        "linear_b":   jax.random.normal(keys[3], (hidden,), jnp.float32) * s,
        "linear0_w":  jax.random.normal(keys[4], (hidden, hidden), jnp.float32) * s,
        "linear0_b":  jax.random.normal(keys[5], (hidden,), jnp.float32) * s,
        "linearR2_w": jax.random.normal(keys[6], (hidden, hidden), jnp.float32) * s,
        "linearR2_b": jax.random.normal(keys[7], (hidden,), jnp.float32) * s,
        "linearR3_w": jax.random.normal(keys[8], (hidden, hidden), jnp.float32) * s,
        "linearR3_b": jax.random.normal(keys[9], (hidden,), jnp.float32) * s,
    }
    prep = prepare_params(params)   # paid once, not per forward call

    for onepole in ("false", "true"):
        for four in ("false", "true"):
            ref = _reference_np(indices, embeddings, params, onepole, four)
            n_out = 4 if four == "true" else 3
            # Exercise both the in-kernel gather path and the XLA-gather path.
            for force_xla in (False, True):
                out = model_forward(indices, embeddings, prep,
                                    onepole=onepole, four=four,
                                    force_xla_gather=force_xla)
                out = jax.block_until_ready(out)
                assert out.shape == (batch, n_out), (out.shape, onepole, four)
                # Loose atol absorbs reduced-precision MXU passes for f32
                # matmuls (intentional); semantic errors would be O(1).
                np.testing.assert_allclose(np.asarray(out, np.float64), ref,
                                           rtol=2e-2, atol=1e-1)

    print("KERNEL_OK")
</pallas_src>

<mosaic_0001>
module attributes {stable_mosaic.version = 11 : i64} {
  func.func @_model_kernel(%arg0: i32, %arg1: memref<16x8xi32, #tpu.memory_space<vmem>>, %arg2: memref<64x32xf32, #tpu.memory_space<vmem>>, %arg3: memref<32x32xf32, #tpu.memory_space<vmem>>, %arg4: memref<32x32xf32, #tpu.memory_space<vmem>>, %arg5: memref<1x32xf32, #tpu.memory_space<vmem>>, %arg6: memref<16x128xf32, #tpu.memory_space<vmem>>) attributes {dimension_semantics = [#tpu.dimension_semantics<parallel>], iteration_bounds = array<i64: 1>, scalar_prefetch = 0 : i64, scratch_operands = 0 : i64, tpu.core_type = #tpu.core_type<tc>, window_params = [{transform_indices = @transform_0, window_bounds = array<i64: 16, 8>}, {pipeline_mode = #tpu.pipeline_mode<synchronous>, transform_indices = @transform_1, window_bounds = array<i64: 64, 32>}, {pipeline_mode = #tpu.pipeline_mode<synchronous>, transform_indices = @transform_2, window_bounds = array<i64: 32, 32>}, {pipeline_mode = #tpu.pipeline_mode<synchronous>, transform_indices = @transform_3, window_bounds = array<i64: 32, 32>}, {pipeline_mode = #tpu.pipeline_mode<synchronous>, transform_indices = @transform_4, window_bounds = array<i64: 1, 32>}, {transform_indices = @transform_5, window_bounds = array<i64: 16, 128>}]} {
    %c0 = arith.constant 0 : index
    %c0_0 = arith.constant 0 : index
    %0 = vector.load %arg2[%c0, %c0_0] : memref<64x32xf32, #tpu.memory_space<vmem>>, vector<64x32xf32>
    %c0_1 = arith.constant 0 : index
    %c0_2 = arith.constant 0 : index
    %1 = vector.load %arg1[%c0_1, %c0_2] : memref<16x8xi32, #tpu.memory_space<vmem>>, vector<16x8xi32>
    %2 = tpu.iota {dimensions = array<i32: 1>} : vector<1x64xi32>
    %3 = vector.extract_strided_slice %1 {offsets = [0, 0], sizes = [16, 1], strides = [1, 1]} : vector<16x8xi32> to vector<16x1xi32>
    %4 = vector.broadcast %3 : vector<16x1xi32> to vector<16x64xi32>
    %5 = vector.broadcast %2 : vector<1x64xi32> to vector<16x64xi32>
    %6 = arith.cmpi eq, %4, %5 : vector<16x64xi32>
    %7 = arith.extui %6 : vector<16x64xi1> to vector<16x64xi32>
    %8 = arith.sitofp %7 : vector<16x64xi32> to vector<16x64xf32>
    %cst = arith.constant dense<0.000000e+00> : vector<16x32xf32>
    %9 = tpu.matmul %8, %0, %cst {dimension_numbers = #tpu.dot_dimension_numbers<[1], [0], [0], [1], [0, 0, 1, 1], [], []>} : vector<16x64xf32>, vector<64x32xf32>, vector<16x32xf32> -> vector<16x32xf32>
    %10 = vector.extract_strided_slice %1 {offsets = [0, 1], sizes = [16, 1], strides = [1, 1]} : vector<16x8xi32> to vector<16x1xi32>
    %11 = vector.broadcast %10 : vector<16x1xi32> to vector<16x64xi32>
    %12 = vector.broadcast %2 : vector<1x64xi32> to vector<16x64xi32>
    %13 = arith.cmpi eq, %11, %12 : vector<16x64xi32>
    %14 = arith.extui %13 : vector<16x64xi1> to vector<16x64xi32>
    %15 = arith.sitofp %14 : vector<16x64xi32> to vector<16x64xf32>
    %cst_3 = arith.constant dense<0.000000e+00> : vector<16x32xf32>
    %16 = tpu.matmul %15, %0, %cst_3 {dimension_numbers = #tpu.dot_dimension_numbers<[1], [0], [0], [1], [0, 0, 1, 1], [], []>} : vector<16x64xf32>, vector<64x32xf32>, vector<16x32xf32> -> vector<16x32xf32>
    %17 = vector.extract_strided_slice %1 {offsets = [0, 2], sizes = [16, 1], strides = [1, 1]} : vector<16x8xi32> to vector<16x1xi32>
    %18 = vector.broadcast %17 : vector<16x1xi32> to vector<16x64xi32>
    %19 = vector.broadcast %2 : vector<1x64xi32> to vector<16x64xi32>
    %20 = arith.cmpi eq, %18, %19 : vector<16x64xi32>
    %21 = arith.extui %20 : vector<16x64xi1> to vector<16x64xi32>
    %22 = arith.sitofp %21 : vector<16x64xi32> to vector<16x64xf32>
    %cst_4 = arith.constant dense<0.000000e+00> : vector<16x32xf32>
    %23 = tpu.matmul %22, %0, %cst_4 {dimension_numbers = #tpu.dot_dimension_numbers<[1], [0], [0], [1], [0, 0, 1, 1], [], []>} : vector<16x64xf32>, vector<64x32xf32>, vector<16x32xf32> -> vector<16x32xf32>
    %24 = vector.extract_strided_slice %1 {offsets = [0, 3], sizes = [16, 1], strides = [1, 1]} : vector<16x8xi32> to vector<16x1xi32>
    %25 = vector.broadcast %24 : vector<16x1xi32> to vector<16x64xi32>
    %26 = vector.broadcast %2 : vector<1x64xi32> to vector<16x64xi32>
    %27 = arith.cmpi eq, %25, %26 : vector<16x64xi32>
    %28 = arith.extui %27 : vector<16x64xi1> to vector<16x64xi32>
    %29 = arith.sitofp %28 : vector<16x64xi32> to vector<16x64xf32>
    %cst_5 = arith.constant dense<0.000000e+00> : vector<16x32xf32>
    %30 = tpu.matmul %29, %0, %cst_5 {dimension_numbers = #tpu.dot_dimension_numbers<[1], [0], [0], [1], [0, 0, 1, 1], [], []>} : vector<16x64xf32>, vector<64x32xf32>, vector<16x32xf32> -> vector<16x32xf32>
    %31 = vector.extract_strided_slice %1 {offsets = [0, 4], sizes = [16, 1], strides = [1, 1]} : vector<16x8xi32> to vector<16x1xi32>
    %32 = vector.broadcast %31 : vector<16x1xi32> to vector<16x64xi32>
    %33 = vector.broadcast %2 : vector<1x64xi32> to vector<16x64xi32>
    %34 = arith.cmpi eq, %32, %33 : vector<16x64xi32>
    %35 = arith.extui %34 : vector<16x64xi1> to vector<16x64xi32>
    %36 = arith.sitofp %35 : vector<16x64xi32> to vector<16x64xf32>
    %cst_6 = arith.constant dense<0.000000e+00> : vector<16x32xf32>
    %37 = tpu.matmul %36, %0, %cst_6 {dimension_numbers = #tpu.dot_dimension_numbers<[1], [0], [0], [1], [0, 0, 1, 1], [], []>} : vector<16x64xf32>, vector<64x32xf32>, vector<16x32xf32> -> vector<16x32xf32>
    %c0_7 = arith.constant 0 : index
    %c0_8 = arith.constant 0 : index
    %38 = vector.load %arg3[%c0_7, %c0_8] : memref<32x32xf32, #tpu.memory_space<vmem>>, vector<32x32xf32>
    %cst_9 = arith.constant dense<0.000000e+00> : vector<16x32xf32>
    %39 = tpu.matmul %9, %38, %cst_9 {dimension_numbers = #tpu.dot_dimension_numbers<[1], [0], [0], [1], [0, 0, 1, 1], [], []>} : vector<16x32xf32>, vector<32x32xf32>, vector<16x32xf32> -> vector<16x32xf32>
    %c0_10 = arith.constant 0 : index
    %c0_11 = arith.constant 0 : index
    %40 = vector.load %arg4[%c0_10, %c0_11] : memref<32x32xf32, #tpu.memory_space<vmem>>, vector<32x32xf32>
    %cst_12 = arith.constant dense<0.000000e+00> : vector<16x32xf32>
    %41 = tpu.matmul %16, %40, %cst_12 {dimension_numbers = #tpu.dot_dimension_numbers<[1], [0], [0], [1], [0, 0, 1, 1], [], []>} : vector<16x32xf32>, vector<32x32xf32>, vector<16x32xf32> -> vector<16x32xf32>
    %42 = arith.addf %39, %41 : vector<16x32xf32>
    %c0_13 = arith.constant 0 : index
    %c0_14 = arith.constant 0 : index
    %43 = vector.load %arg5[%c0_13, %c0_14] : memref<1x32xf32, #tpu.memory_space<vmem>>, vector<1x32xf32>
    %44 = vector.broadcast %43 : vector<1x32xf32> to vector<16x32xf32>
    %45 = arith.addf %42, %44 : vector<16x32xf32>
    %46 = arith.mulf %45, %23 : vector<16x32xf32>
    %cst_15 = arith.constant dense<0.000000e+00> : vector<16xf32>
    %47 = vector.multi_reduction <add>, %46, %cst_15 [1] : vector<16x32xf32> to vector<16xf32>
    %48 = vector.shape_cast %47 : vector<16xf32> to vector<16x1xf32>
    %49 = arith.mulf %45, %30 : vector<16x32xf32>
    %cst_16 = arith.constant dense<0.000000e+00> : vector<16xf32>
    %50 = vector.multi_reduction <add>, %49, %cst_16 [1] : vector<16x32xf32> to vector<16xf32>
    %51 = vector.shape_cast %50 : vector<16xf32> to vector<16x1xf32>
    %52 = arith.mulf %45, %37 : vector<16x32xf32>
    %cst_17 = arith.constant dense<0.000000e+00> : vector<16xf32>
    %53 = vector.multi_reduction <add>, %52, %cst_17 [1] : vector<16x32xf32> to vector<16xf32>
    %54 = vector.shape_cast %53 : vector<16xf32> to vector<16x1xf32>
    %55 = tpu.iota {dimensions = array<i32: 1>} : vector<1x128xi32>
    %c2_i32 = arith.constant 2 : i32
    %56 = vector.broadcast %c2_i32 : i32 to vector<1x128xi32>
    %57 = arith.cmpi eq, %55, %56 : vector<1x128xi32>
    %cst_18 = arith.constant 0.000000e+00 : f32
    %58 = vector.shape_cast %57 : vector<1x128xi1> to vector<1x128xi1>
    %59 = vector.broadcast %58 : vector<1x128xi1> to vector<16x128xi1>
    %60 = vector.shape_cast %54 : vector<16x1xf32> to vector<16x1xf32>
    %61 = vector.broadcast %60 : vector<16x1xf32> to vector<16x128xf32>
    %62 = vector.broadcast %cst_18 : f32 to vector<16x128xf32>
    %63 = arith.select %59, %61, %62 : vector<16x128xi1>, vector<16x128xf32>
    %c1_i32 = arith.constant 1 : i32
    %64 = vector.broadcast %c1_i32 : i32 to vector<1x128xi32>
    %65 = arith.cmpi eq, %55, %64 : vector<1x128xi32>
    %66 = vector.shape_cast %65 : vector<1x128xi1> to vector<1x128xi1>
    %67 = vector.broadcast %66 : vector<1x128xi1> to vector<16x128xi1>
    %68 = vector.shape_cast %51 : vector<16x1xf32> to vector<16x1xf32>
    %69 = vector.broadcast %68 : vector<16x1xf32> to vector<16x128xf32>
    %70 = arith.select %67, %69, %63 : vector<16x128xi1>, vector<16x128xf32>
    %c0_i32 = arith.constant 0 : i32
    %71 = vector.broadcast %c0_i32 : i32 to vector<1x128xi32>
    %72 = arith.cmpi eq, %55, %71 : vector<1x128xi32>
    %73 = vector.shape_cast %72 : vector<1x128xi1> to vector<1x128xi1>
    %74 = vector.broadcast %73 : vector<1x128xi1> to vector<16x128xi1>
    %75 = vector.shape_cast %48 : vector<16x1xf32> to vector<16x1xf32>
    %76 = vector.broadcast %75 : vector<16x1xf32> to vector<16x128xf32>
    %77 = arith.select %74, %76, %70 : vector<16x128xi1>, vector<16x128xf32>
    %c0_19 = arith.constant 0 : index
    %c0_20 = arith.constant 0 : index
    %78 = vector.load %arg6[%c0_19, %c0_20] : memref<16x128xf32, #tpu.memory_space<vmem>>, vector<16x128xf32>
    tpu.vector_store %arg6[%c0_19, %c0_20], %77 {strides = array<i32>} : memref<16x128xf32, #tpu.memory_space<vmem>>, vector<16x128xf32>,
    return
  }
  func.func @transform_0(%arg0: i32) -> (i32, i32) {
    %c0_i32 = arith.constant 0 : i32
    %c0_i32_0 = arith.constant 0 : i32
    return %arg0, %c0_i32 : i32, i32
  }
  func.func @transform_1(%arg0: i32) -> (i32, i32) {
    %c0_i32 = arith.constant 0 : i32
    %c0_i32_0 = arith.constant 0 : i32
    %c0_i32_1 = arith.constant 0 : i32
    return %c0_i32, %c0_i32_0 : i32, i32
  }
  func.func @transform_2(%arg0: i32) -> (i32, i32) {
    %c0_i32 = arith.constant 0 : i32
    %c0_i32_0 = arith.constant 0 : i32
    %c0_i32_1 = arith.constant 0 : i32
    return %c0_i32, %c0_i32_0 : i32, i32
  }
  func.func @transform_3(%arg0: i32) -> (i32, i32) {
    %c0_i32 = arith.constant 0 : i32
    %c0_i32_0 = arith.constant 0 : i32
    %c0_i32_1 = arith.constant 0 : i32
    return %c0_i32, %c0_i32_0 : i32, i32
  }
  func.func @transform_4(%arg0: i32) -> (i32, i32) {
    %c0_i32 = arith.constant 0 : i32
    %c0_i32_0 = arith.constant 0 : i32
    %c0_i32_1 = arith.constant 0 : i32
    return %c0_i32, %c0_i32_0 : i32, i32
  }
  func.func @transform_5(%arg0: i32) -> (i32, i32) {
    %c0_i32 = arith.constant 0 : i32
    %c0_i32_0 = arith.constant 0 : i32
    return %arg0, %c0_i32 : i32, i32
  }
}

</mosaic_0001>

<bundles_post_ra>
// kernel: model_forward.1
= control target key start
LH: loop header
LB: loop body
LE: loop exit
PB: predicated region body
PF: predicated region fallthrough
CT: control target
= control target key end

     0   :  { %v941_v0 = vmov 1   ;;  %v942_v1 = vmov 0   ;;  %v943_v12 = vmov 3   ;;  %v944_v13 = vmov 2   ;;  %s1181_s0 = inlined_call_operand.vmem [shape: s32[16,8], index: 0, kind: input, shape index: {}]   ;;  %s1182_s1 = inlined_call_operand.vmem [shape: f32[64,32], index: 1, kind: input, shape index: {}]   ;;  %s1183_s3 = inlined_call_operand.vmem [shape: f32[32,32], index: 3, kind: input, shape index: {}]   ;;  %s1184_s2 = inlined_call_operand.vmem [shape: f32[32,32], index: 2, kind: input, shape index: {}]   ;;  %s1185_s4 = inlined_call_operand.vmem [shape: f32[1,32], index: 4, kind: input, shape index: {}]   ;;  %s1186_s5 = inlined_call_operand.vmem [shape: f32[16,128], index: 5, kind: output, shape index: {}]  }
   0x1   :  { %933 = vset.pattern.permute.xlu0 %v941_v0  ;;  %934 = vset.pattern.permute.xlu1 %v942_v1  ;;  %v28_v2 = vld [vmem:[%s1181_s0] sm:$0xff]  ;;  %v983_v3 = vld [vmem:[%s1182_s1 + $0x38] sm:$0xff]  ;;  %v988_v4 = vld [vmem:[%s1182_s1 + $0x30] sm:$0xff]  ;;  %v945_v14 = vmov 4   ;;  %v30_v15 = vlaneseq  ;;  %vm44_vm0 = vcmask 523264   ;;  %v946_v19 = vmov 0.0  }
   0x2   :  { %127 = vperm.xlu0 %933, %v28_v2   ;;  %33 = vperm.xlu1 %934, %v28_v2   ;;  %v29_v5 = vld [vmem:[%s1181_s0 + $0x8] sm:$0xff]  ;;  %v1009_v7 = vld [vmem:[%s1182_s1 + $0x20] sm:$0xff]  ;;  %v1018_v8 = vld [vmem:[%s1182_s1 + $0x18] sm:$0xff]  ;;  %vm506_vm11 = vcmask 261120  }
   0x3   :  { %829 = vmatprep.subr.mxu1 %v983_v3  ;;  %810 = vmatprep.subr.mxu0 %v983_v3  ;;  %v1002_v6 = vld [vmem:[%s1182_s1 + $0x28] sm:$0xff]  ;;  %v1027_v9 = vld [vmem:[%s1182_s1 + $0x10] sm:$0xff]  ;;  %v1045_v11 = vld [vmem:[%s1182_s1] sm:$0xff]  ;;  %v1057_v16 = vand.u32 127, %v30_v15 }
   0x4   :  { %830 = vmatpush3.msra.mxu1 %v983_v3  ;;  %811 = vmatpush3.msra.mxu0 %v983_v3  ;;  %v1036_v10 = vld [vmem:[%s1182_s1 + $0x8] sm:$0xff]  ;;  %v505_v30 = vld [vmem:[%s1183_s3 + $0x18] sm:$0xff]  ;;  %v504_v31 = vld [vmem:[%s1183_s3 + $0x10] sm:$0xff] }
   0x5   :  { %831 = vmatprep.subr.mxu1 %v988_v4  ;;  %812 = vmatprep.subr.mxu0 %v988_v4  ;;  %v503_v34 = vld [vmem:[%s1183_s3 + $0x8] sm:$0xff]  ;;  %v502_v37 = vld [vmem:[%s1183_s3] sm:$0xff]  ;;  %v501_v38 = vld [vmem:[%s1184_s2 + $0x18] sm:$0xff]  ;;  %vm702_vm12 = vcmp.eq.s32.totalorder %v1057_v16, 2  ;;  %vm712_vm13 = vcmp.eq.s32.totalorder %v1057_v16, 0  ;;  %vm707_vm14 = vcmp.eq.s32.totalorder %v1057_v16, 1 }
   0x6   :  { %130 = vperm.xlu0 %933, %v29_v5   ;;  %36 = vperm.xlu1 %934, %v29_v5   ;;  %v500_v47 = vld [vmem:[%s1184_s2 + $0x10] sm:$0xff]  ;;  %v499_v48 = vld [vmem:[%s1184_s2 + $0x8] sm:$0xff]  ;;  %v498_v49 = vld [vmem:[%s1184_s2] sm:$0xff] }
   0x7   :  { %832 = vmatpush3.msra.mxu1 %v988_v4  ;;  %813 = vmatpush3.msra.mxu0 %v988_v4  ;;  %v747_v57 = vld [vmem:[%s1185_s4] ss:$0 sm:$0xff] }
   0x8   :  { %833 = vmatprep.subr.mxu1 %v1002_v6  ;;  %814 = vmatprep.subr.mxu0 %v1002_v6 }
   0x9   :  { %834 = vmatpush3.msra.mxu1 %v1002_v6  ;;  %815 = vmatpush3.msra.mxu0 %v1002_v6 }
   0xa   :  { %835 = vmatprep.subr.mxu1 %v1009_v7  ;;  %816 = vmatprep.subr.mxu0 %v1009_v7 }
   0xb   :  { %836 = vmatpush3.msra.mxu1 %v1009_v7  ;;  %817 = vmatpush3.msra.mxu0 %v1009_v7 }
   0xc   :  { %837 = vmatprep.subr.mxu1 %v1018_v8  ;;  %818 = vmatprep.subr.mxu0 %v1018_v8 }
   0xd   :  { %838 = vmatpush3.msra.mxu1 %v1018_v8  ;;  %819 = vmatpush3.msra.mxu0 %v1018_v8 }
   0xe   :  { %839 = vmatprep.subr.mxu1 %v1027_v9  ;;  %820 = vmatprep.subr.mxu0 %v1027_v9 }
   0xf   :  { %840 = vmatpush3.msra.mxu1 %v1027_v9  ;;  %821 = vmatpush3.msra.mxu0 %v1027_v9 }
  0x10   :  { %841 = vmatprep.subr.mxu1 %v1036_v10  ;;  %822 = vmatprep.subr.mxu0 %v1036_v10 }
  0x11   :  { %842 = vmatpush3.msra.mxu1 %v1036_v10  ;;  %823 = vmatpush3.msra.mxu0 %v1036_v10 }
  0x12   :  { %843 = vmatprep.subr.mxu1 %v1045_v11  ;;  %824 = vmatprep.subr.mxu0 %v1045_v11 }
  0x13   :  { %844 = vmatpush3.msra.mxu1 %v1045_v11  ;;  %825 = vmatpush3.msra.mxu0 %v1045_v11 }
  0x14   :  { %936 = vset.pattern.permute.xlu1 %v943_v12  ;;  %935 = vset.pattern.permute.xlu0 %v943_v12 }
  0x15   :  { %316 = vperm.xlu1 %936, %v29_v5   ;;  %313 = vperm.xlu0 %935, %v28_v2  }
  0x16   :  { %867 = vmatprep.subr.mxu1 %v983_v3  ;;  %848 = vmatprep.subr.mxu0 %v983_v3 }
  0x19   :  { %937 = vset.pattern.permute.xlu1 %v944_v13  ;;  %938 = vset.pattern.permute.xlu0 %v944_v13 }
  0x1a   :  { %220 = vperm.xlu1 %937, %v28_v2   ;;  %223 = vperm.xlu0 %938, %v29_v5  }
  0x1e   :  { %939 = vset.pattern.permute.xlu1 %v945_v14  ;;  %940 = vset.pattern.permute.xlu0 %v945_v14 }
  0x1f   :  { %406 = vperm.xlu1 %939, %v28_v2  }
  0x23   :  { %409 = vperm.xlu1 %939, %v29_v5  }
  0x7d   :  { %v128_v17 = vpop.permute.xlu0 %127  ;;  %v34_v18 = vpop.permute.xlu1 %33 }
  0x7e   :  { %vm132_vm1 = vcmp.eq.s32.totalorder %v128_v17, %v1057_v16  ;;  %vm38_vm2 = vcmp.eq.s32.totalorder %v34_v18, %v1057_v16 }
  0x7f   :  { %v727_v20 = vsel %vm132_vm1, 1.0, %v946_v19  ;;  %v723_v21 = vsel %vm38_vm2, 1.0, %v946_v19 }
  0x80   :  { %845 = vmatprep.mubr.msk.f32.mxu1 %vm44_vm0, %v727_v20  ;;  %826 = vmatprep.mubr.msk.f32.mxu0 %vm44_vm0, %v723_v21 }
  0x81   :  { %v131_v22 = vpop.permute.xlu0 %130  ;;  %v37_v23 = vpop.permute.xlu1 %36 }
  0x82   :  { %vm133_vm3 = vcmp.eq.s32.totalorder %v131_v22, %v1057_v16  ;;  %vm39_vm4 = vcmp.eq.s32.totalorder %v37_v23, %v1057_v16 }
  0x83   :  { %v728_v24 = vsel %vm133_vm3, 1.0, %v946_v19  ;;  %v724_v25 = vsel %vm39_vm4, 1.0, %v946_v19 }
  0x84   :  { %846 = vmatmul.mubr.msk.f32.vlgmr.msra.gmra.mxu1 %vm44_vm0, %v728_v24  ;;  %827 = vmatmul.mubr.msk.f32.vlgmr.msra.gmra.mxu0 %vm44_vm0, %v724_v25 }
  0x85   :  { %868 = vmatpush3.msra.mxu1 %v983_v3  ;;  %849 = vmatpush3.msra.mxu0 %v983_v3 }
  0x86   :  { %869 = vmatprep.subr.mxu1 %v988_v4  ;;  %850 = vmatprep.subr.mxu0 %v988_v4 }
  0x87   :  { %870 = vmatpush3.msra.mxu1 %v988_v4  ;;  %851 = vmatpush3.msra.mxu0 %v988_v4 }
  0x88   :  { %871 = vmatprep.subr.mxu1 %v1002_v6  ;;  %852 = vmatprep.subr.mxu0 %v1002_v6 }
  0x89   :  { %872 = vmatpush3.msra.mxu1 %v1002_v6  ;;  %853 = vmatpush3.msra.mxu0 %v1002_v6 }
  0x8a   :  { %873 = vmatprep.subr.mxu1 %v1009_v7  ;;  %854 = vmatprep.subr.mxu0 %v1009_v7 }
  0x8b   :  { %874 = vmatpush3.msra.mxu1 %v1009_v7  ;;  %855 = vmatpush3.msra.mxu0 %v1009_v7 }
  0x8c   :  { %875 = vmatprep.subr.mxu1 %v1018_v8  ;;  %856 = vmatprep.subr.mxu0 %v1018_v8 }
  0x8d   :  { %876 = vmatpush3.msra.mxu1 %v1018_v8  ;;  %857 = vmatpush3.msra.mxu0 %v1018_v8 }
  0x8e   :  { %877 = vmatprep.subr.mxu1 %v1027_v9  ;;  %858 = vmatprep.subr.mxu0 %v1027_v9 }
  0x8f   :  { %878 = vmatpush3.msra.mxu1 %v1027_v9  ;;  %859 = vmatpush3.msra.mxu0 %v1027_v9 }
  0x90   :  { %v317_v26 = vpop.permute.xlu1 %316  ;;  %v314_v27 = vpop.permute.xlu0 %313  ;;  %879 = vmatprep.subr.mxu1 %v1036_v10  ;;  %860 = vmatprep.subr.mxu0 %v1036_v10 }
  0x91   :  { %vm319_vm5 = vcmp.eq.s32.totalorder %v317_v26, %v1057_v16  ;;  %vm318_vm6 = vcmp.eq.s32.totalorder %v314_v27, %v1057_v16  ;;  %880 = vmatpush3.msra.mxu1 %v1036_v10  ;;  %861 = vmatpush3.msra.mxu0 %v1036_v10 }
  0x92   :  { %v736_v28 = vsel %vm319_vm5, 1.0, %v946_v19  ;;  %v735_v29 = vsel %vm318_vm6, 1.0, %v946_v19  ;;  %881 = vmatprep.subr.mxu1 %v1045_v11  ;;  %862 = vmatprep.subr.mxu0 %v1045_v11 }
  0x93   :  { %882 = vmatpush3.msra.mxu1 %v1045_v11  ;;  %883 = vmatprep.mubr.msk.f32.mxu1 %vm44_vm0, %v735_v29 }
  0x94   :  { %863 = vmatpush3.msra.mxu0 %v1045_v11  ;;  %884 = vmatmul.mubr.msk.f32.vlgmr.msra.gmra.mxu1 %vm44_vm0, %v736_v28 }
  0x95   :  { %v221_v32 = vpop.permute.xlu1 %220  ;;  %v224_v33 = vpop.permute.xlu0 %223  ;;  %886 = vmatprep.subr.mxu0 %v983_v3  ;;  %905 = vmatprep.subr.mxu1 %v505_v30 }
  0x96   :  { %vm225_vm7 = vcmp.eq.s32.totalorder %v221_v32, %v1057_v16  ;;  %vm226_vm8 = vcmp.eq.s32.totalorder %v224_v33, %v1057_v16  ;;  %906 = vmatpush3.msra.mxu1 %v505_v30 }
  0x97   :  { %v731_v35 = vsel %vm225_vm7, 1.0, %v946_v19  ;;  %v732_v36 = vsel %vm226_vm8, 1.0, %v946_v19  ;;  %907 = vmatprep.subr.mxu1 %v504_v31 }
  0x98   :  { %864 = vmatprep.mubr.msk.f32.mxu0 %vm44_vm0, %v731_v35  ;;  %908 = vmatpush3.msra.mxu1 %v504_v31 }
  0x99   :  { %865 = vmatmul.mubr.msk.f32.vlgmr.msra.gmra.mxu0 %vm44_vm0, %v732_v36  ;;  %909 = vmatprep.subr.mxu1 %v503_v34 }
  0x9a   :  { %887 = vmatpush3.msra.mxu0 %v983_v3  ;;  %910 = vmatpush3.msra.mxu1 %v503_v34  ;;  %v407_v39 = vpop.permute.xlu1 %406 }
  0x9b   :  { %888 = vmatprep.subr.mxu0 %v988_v4  ;;  %911 = vmatprep.subr.mxu1 %v502_v37  ;;  %vm411_vm9 = vcmp.eq.s32.totalorder %v407_v39, %v1057_v16 }
  0x9c   :  { %889 = vmatpush3.msra.mxu0 %v988_v4  ;;  %912 = vmatpush3.msra.mxu1 %v502_v37  ;;  %v739_v40 = vsel %vm411_vm9, 1.0, %v946_v19 }
  0x9d   :  { %890 = vmatprep.subr.mxu0 %v1002_v6  ;;  %916 = vmatprep.subr.mxu1 %v501_v38 }
  0x9e   :  { %891 = vmatpush3.msra.mxu0 %v1002_v6  ;;  %902 = vmatprep.mubr.msk.f32.mxu0 %vm44_vm0, %v739_v40  ;;  %v410_v41 = vpop.permute.xlu1 %409 }
  0x9f   :  { %892 = vmatprep.subr.mxu0 %v1009_v7  ;;  %vm412_vm10 = vcmp.eq.s32.totalorder %v410_v41, %v1057_v16 }
  0xa0   :  { %893 = vmatpush3.msra.mxu0 %v1009_v7  ;;  %v740_v42 = vsel %vm412_vm10, 1.0, %v946_v19 }
  0xa1   :  { %894 = vmatprep.subr.mxu0 %v1018_v8 }
  0xa2   :  { %895 = vmatpush3.msra.mxu0 %v1018_v8 }
  0xa3   :  { %896 = vmatprep.subr.mxu0 %v1027_v9 }
  0xa4   :  { %897 = vmatpush3.msra.mxu0 %v1027_v9 }
  0xa5   :  { %898 = vmatprep.subr.mxu0 %v1036_v10 }
  0xa6   :  { %899 = vmatpush3.msra.mxu0 %v1036_v10 }
  0xa7   :  { %900 = vmatprep.subr.mxu0 %v1045_v11 }
  0xa8   :  { %901 = vmatpush3.msra.mxu0 %v1045_v11 }
  0xa9   :  { %903 = vmatmul.mubr.msk.f32.vlgmr.msra.gmra.mxu0 %vm44_vm0, %v740_v42 }
 0x144   :  { %v847_v43 = vpop.f32.mrf.mxu1  ;;  %v828_v44 = vpop.f32.mrf.mxu0 }
 0x146   :  { %v210_v45 = vpop.f32.mrf.mxu1  ;;  %v117_v46 = vpop.f32.mrf.mxu0 }
 0x147   :  { %913 = vmatprep.mubr.msk.f32.mxu1 %vm506_vm11, %v210_v45 }
 0x148   :  { %914 = vmatmul.mubr.msk.f32.vlgmr.msra.gmra.mxu1 %vm506_vm11, %v847_v43 }
 0x149   :  { %917 = vmatpush3.msra.mxu1 %v501_v38  ;;  %924 = vmatprep.mubr.msk.f32.mxu1 %vm506_vm11, %v117_v46 }
 0x14a   :  { %918 = vmatprep.subr.mxu1 %v500_v47 }
 0x14b   :  { %919 = vmatpush3.msra.mxu1 %v500_v47 }
 0x14c   :  { %920 = vmatprep.subr.mxu1 %v499_v48 }
 0x14d   :  { %921 = vmatpush3.msra.mxu1 %v499_v48 }
 0x14e   :  { %922 = vmatprep.subr.mxu1 %v498_v49 }
 0x14f   :  { %923 = vmatpush3.msra.mxu1 %v498_v49 }
 0x150   :  { %925 = vmatmul.mubr.msk.f32.vlgmr.msra.gmra.mxu1 %vm506_vm11, %v828_v44 }
 0x154   :  { %v885_v50 = vpop.f32.mrf.mxu1 }
 0x156   :  { %v396_v51 = vpop.f32.mrf.mxu1 }
 0x159   :  { %v866_v53 = vpop.f32.mrf.mxu0 }
 0x15b   :  { %v303_v55 = vpop.f32.mrf.mxu0 }
 0x169   :  { %v904_v59 = vpop.f32.mrf.mxu0 }
 0x16b   :  { %v489_v2 = vpop.f32.mrf.mxu0 }
 0x208   :  { %v915_v52 = vpop.f32.mrf.mxu1 }
 0x20a   :  { %v579_v54 = vpop.f32.mrf.mxu1 }
 0x210   :  { %v926_v56 = vpop.f32.mrf.mxu1 }
 0x211   :  { %v666_v58 = vadd.f32 %v926_v56, %v915_v52 }
 0x212   :  { %v660_v60 = vpop.f32.mrf.mxu1 }
 0x213   :  { %v677_v61 = vadd.f32 %v747_v57, %v666_v58  ;;  %v661_v62 = vadd.f32 %v660_v60, %v579_v54 }
 0x215   :  { %v676_v63 = vadd.f32 %v747_v57, %v661_v62  ;;  %v687_v0 = vmul.f32 %v885_v50, %v677_v61  ;;  %v695_v1 = vmul.f32 %v904_v59, %v677_v61  ;;  %v679_v11 = vmul.f32 %v866_v53, %v677_v61 }
 0x217   :  { %v691_v3 = vsel %vm506_vm11, %v687_v0, 0.0  ;;  %v699_v4 = vsel %vm506_vm11, %v695_v1, 0.0  ;;  %v678_v5 = vmul.f32 %v676_v63, %v303_v55  ;;  %v694_v6 = vmul.f32 %v676_v63, %v489_v2 }
 0x218   :  { %692 = vadd.xlane.f32.xlu0 %v691_v3  ;;  %700 = vadd.xlane.f32.xlu1 %v699_v4  ;;  %v686_v9 = vmul.f32 %v676_v63, %v396_v51  ;;  %v683_v12 = vsel %vm506_vm11, %v679_v11, 0.0 }
 0x219   :  { %v680_v7 = vsel %vm506_vm11, %v678_v5, 0.0  ;;  %v696_v8 = vsel %vm506_vm11, %v694_v6, 0.0 }
 0x21a   :  { %v688_v10 = vsel %vm506_vm11, %v686_v9, 0.0 }
 0x21c   :  { %681 = vadd.xlane.f32.xlu1 %v680_v7  ;;  %697 = vadd.xlane.f32.xlu0 %v696_v8 }
 0x220   :  { %689 = vadd.xlane.f32.xlu0 %v688_v10 }
 0x224   :  { %684 = vadd.xlane.f32.xlu0 %v683_v12 }
 0x2a1   :  { %v693_v13 = vpop.xlane.xlu0 %692  ;;  %v701_v14 = vpop.xlane.xlu1 %700 }
 0x2a2   :  { %v706_v19 = vsel %vm702_vm12, %v701_v14, 0.0 }
 0x2a3   :  { %v711_v23 = vsel %vm707_vm14, %v693_v13, %v706_v19 }
 0x2a5   :  { %v698_v15 = vpop.xlane.xlu0 %697  ;;  %v682_v20 = vpop.xlane.xlu1 %681 }
 0x2a6   :  { %v705_v17 = vsel %vm702_vm12, %v698_v15, 0.0 }
 0x2a9   :  { %v690_v18 = vpop.xlane.xlu0 %689 }
 0x2aa   :  { %v710_v21 = vsel %vm707_vm14, %v690_v18, %v705_v17 }
 0x2ab   :  { %v715_v22 = vsel %vm712_vm13, %v682_v20, %v710_v21 }
 0x2ac   :  { %717 = vst [vmem:[%s1186_s5] sm:$0xff] %v715_v22 }
 0x2ad   :  { %v685_v24 = vpop.xlane.xlu0 %684 }
 0x2ae   :  { %v716_v25 = vsel %vm712_vm13, %v685_v24, %v711_v23 }
 0x2af   :  { %718 = vst [vmem:[%s1186_s5 + $0x8] sm:$0xff] %v716_v25 }

</bundles_post_ra>
